<compile_context>
chip_gen: v6e
topology: v6e:2x2x1
jax: 0.10.0
libtpu: 0.0.40
codegen_flags: <defaults>
</compile_context>

<pallas_src>
import functools

import jax
import jax.numpy as jnp
from jax.experimental import pallas as pl
from jax.experimental.pallas import tpu as pltpu

IN_DIM = 94           # fixed by the module
IN_PAD = 128          # in-kernel lane-padded contraction width for the first matmul
HIDDEN = 32           # args.hidden_neurons (synthetic choice)
OUT_DIM = 16          # args.output_dim     (synthetic choice)
CLS_DIM = 2
OUT_PACK = 32         # packed output lanes: feat @ [0:16), cls @ [16:18), zeros elsewhere


def _mlp_kernel(x_ref,
                w1_ref, b1_ref,
                w2_ref, b2_ref,
                w3_ref, b3_ref,
                w4_ref, b4_ref,
                w5_ref, b5_ref,
                out_ref):
    # (tb, 94) input block -> bf16; zero-pad the contraction dim to 128 with
    # EXACT zeros (and w1 rows [94:128) are zero too), so padded lanes add 0.
    xb = x_ref[...].astype(jnp.bfloat16)                              # (tb, 94)
    pad = jnp.zeros((xb.shape[0], IN_PAD - IN_DIM), jnp.bfloat16)     # (tb, 34)
    x = jnp.concatenate([xb, pad], axis=-1)                           # (tb, 128)

    # ---------------- MLP1 ----------------
    h1 = jnp.dot(x, w1_ref[...], preferred_element_type=jnp.float32) + b1_ref[...]
    h1 = jnp.maximum(h1, 0.0).astype(jnp.bfloat16)         # bias/ReLU in f32, bf16 for MXU
    h2 = jnp.dot(h1, w2_ref[...], preferred_element_type=jnp.float32) + b2_ref[...]
    h2 = jnp.maximum(h2, 0.0).astype(jnp.bfloat16)
    # w3p/b3p are zero-padded so the feature occupies lanes [0, OUT_DIM) exactly,
    # lanes [OUT_DIM, OUT_PACK) are exactly 0.
    feat = jnp.dot(h2, w3_ref[...], preferred_element_type=jnp.float32) + b3_ref[...]

    # ---------------- MLP2 ----------------
    # w4p rows [OUT_DIM, OUT_PACK) are zero, so the (exactly zero) padded
    # feature lanes contribute nothing.
    h3 = jnp.dot(feat.astype(jnp.bfloat16), w4_ref[...],
                 preferred_element_type=jnp.float32) + b4_ref[...]
    h3 = jnp.maximum(h3, 0.0).astype(jnp.bfloat16)
    # w5p/b5p are zero-padded so classification occupies lanes [OUT_DIM, OUT_DIM+CLS_DIM).
    cls = jnp.dot(h3, w5_ref[...], preferred_element_type=jnp.float32) + b5_ref[...]

    # feat and cls have disjoint, zero-padded lane support -> one packed (tb, 32) store.
    out_ref[...] = (feat + cls).astype(out_ref.dtype)


def _round_up(n, m):
    return (n + m - 1) // m * m


def init_params(key):
    """Deterministic synthetic parameters; weights stored as (in, out) = PyTorch W.T."""
    ks = jax.random.split(key, 10)

    def lin(kw, kb, din, dout):
        w = jax.random.normal(kw, (din, dout), jnp.float32) * (1.0 / jnp.sqrt(din))
        b = jax.random.normal(kb, (dout,), jnp.float32) * 0.01
        return w, b

    w1, b1 = lin(ks[0], ks[1], IN_DIM, HIDDEN)
    w2, b2 = lin(ks[2], ks[3], HIDDEN, HIDDEN)
    w3, b3 = lin(ks[4], ks[5], HIDDEN, OUT_DIM)
    w4, b4 = lin(ks[6], ks[7], OUT_DIM, HIDDEN)
    w5, b5 = lin(ks[8], ks[9], HIDDEN, CLS_DIM)
    return (w1, b1, w2, b2, w3, b3, w4, b4, w5, b5)


def pack_params(params):
    """Pad + cast raw (in, out) weights into the lane-aligned bf16 kernel layout.

    Invariant required by the fused `feat + cls` store: w3p/b3p only have
    support on lanes [0, OUT_DIM); w5p/b5p only on [OUT_DIM, OUT_DIM+CLS_DIM);
    w1p rows [IN_DIM, IN_PAD) and w4p rows [OUT_DIM, OUT_PACK) are zero.
    """
    (w1, b1, w2, b2, w3, b3, w4, b4, w5, b5) = params
    f32, bf16 = jnp.float32, jnp.bfloat16

    w1p = jnp.zeros((IN_PAD, HIDDEN), f32).at[:IN_DIM, :].set(w1).astype(bf16)
    b1p = b1.reshape(1, HIDDEN).astype(f32)
    w2p = w2.astype(bf16)
    b2p = b2.reshape(1, HIDDEN).astype(f32)
    w3p = jnp.zeros((HIDDEN, OUT_PACK), f32).at[:, :OUT_DIM].set(w3).astype(bf16)
    b3p = jnp.zeros((1, OUT_PACK), f32).at[:, :OUT_DIM].set(b3.reshape(1, OUT_DIM))
    w4p = jnp.zeros((OUT_PACK, HIDDEN), f32).at[:OUT_DIM, :].set(w4).astype(bf16)
    b4p = b4.reshape(1, HIDDEN).astype(f32)
    w5p = (jnp.zeros((HIDDEN, OUT_PACK), f32)
           .at[:, OUT_DIM:OUT_DIM + CLS_DIM].set(w5).astype(bf16))
    b5p = (jnp.zeros((1, OUT_PACK), f32)
           .at[:, OUT_DIM:OUT_DIM + CLS_DIM].set(b5.reshape(1, CLS_DIM)))
    return (w1p, b1p, w2p, b2p, w3p, b3p, w4p, b4p, w5p, b5p)


def _choose_tile(batch, block_b):
    b8 = _round_up(max(batch, 1), 8)
    tb = min(block_b, b8)
    # Keep >= 2 grid steps when the batch allows it so the "parallel" grid axis
    # actually shards work across both TensorCores on v7x.
    if pl.cdiv(batch, tb) < 2 and b8 >= 16:
        tb = _round_up(pl.cdiv(b8, 2), 8)
    return tb


@functools.partial(jax.jit, static_argnames=("block_b",))
def mlp_ce_deepcluster(x, packed_params, block_b=4096):
    """Forward pass. x: (B, 94). Returns (feature (B,16) f32, classification (B,2) f32)."""
    B = x.shape[0]
    tb = _choose_tile(B, block_b)
    grid = (pl.cdiv(B, tb),)
    # No HBM-side padding/copy of x: the (tb, 94) block's last dim equals the full
    # array dim.  A partial final batch block reads unspecified rows (harmless:
    # the math is row-independent) and its out-of-bounds writes are dropped.

    x_spec = pl.BlockSpec((tb, IN_DIM), lambda i: (i, 0))
    # Weights/biases: full-array blocks with constant index_map -> VMEM-resident.
    weight_specs = [pl.BlockSpec(p.shape, lambda i: (0, 0)) for p in packed_params]
    out_spec = pl.BlockSpec((tb, OUT_PACK), lambda i: (i, 0))

    flops = 2 * B * (IN_PAD * HIDDEN + HIDDEN * HIDDEN + HIDDEN * OUT_PACK
                     + OUT_PACK * HIDDEN + HIDDEN * OUT_PACK)
    weight_bytes = sum(int(p.size) * p.dtype.itemsize for p in packed_params)
    bytes_accessed = (B * IN_DIM * x.dtype.itemsize     # single read of x
                      + B * OUT_PACK * 4                # single packed f32 write
                      + weight_bytes)

    out = pl.pallas_call(
        _mlp_kernel,
        out_shape=jax.ShapeDtypeStruct((B, OUT_PACK), jnp.float32),
        grid=grid,
        in_specs=[x_spec] + weight_specs,
        out_specs=out_spec,
        compiler_params=pltpu.CompilerParams(
            dimension_semantics=("parallel",),
            vmem_limit_bytes=32 * 1024 * 1024),
        cost_estimate=pl.CostEstimate(
            flops=flops, transcendentals=0, bytes_accessed=bytes_accessed),
    )(x, *packed_params)

    feat = out[:, :OUT_DIM]
    cls = out[:, OUT_DIM:OUT_DIM + CLS_DIM]
    return feat, cls


def reference_forward(x, params):
    """Pure-f32 forward with the exact semantics of the PyTorch module."""
    (w1, b1, w2, b2, w3, b3, w4, b4, w5, b5) = params
    h = jax.nn.relu(x @ w1 + b1)
    h = jax.nn.relu(h @ w2 + b2)
    feat = h @ w3 + b3
    h = jax.nn.relu(feat @ w4 + b4)
    cls = h @ w5 + b5
    return feat, cls


def reference_forward_bf16(x, params):
    """Same math with the kernel's precision: bf16 MXU operands, f32 accumulate/bias."""
    bf = jnp.bfloat16
    (w1, b1, w2, b2, w3, b3, w4, b4, w5, b5) = params

    def mm(a, w):
        return jnp.dot(a.astype(bf), w.astype(bf), preferred_element_type=jnp.float32)

    h = jax.nn.relu(mm(x, w1) + b1)
    h = jax.nn.relu(mm(h, w2) + b2)
    feat = mm(h, w3) + b3
    h = jax.nn.relu(mm(feat, w4) + b4)
    cls = mm(h, w5) + b5
    return feat, cls


if __name__ == "__main__":
    key = jax.random.PRNGKey(0)
    kx, kp = jax.random.split(key)

    B = 32
    x = jax.random.normal(kx, (B, IN_DIM), jnp.float32)
    params = init_params(kp)
    packed = pack_params(params)

    feat, cls = mlp_ce_deepcluster(x, packed)
    jax.block_until_ready((feat, cls))

    assert feat.shape == (B, OUT_DIM) and cls.shape == (B, CLS_DIM)

    # Precision-matched reference (bf16 operands, f32 accumulation) -> tight check.
    feat_ref, cls_ref = reference_forward_bf16(x, params)
    assert jnp.allclose(feat, feat_ref, atol=1e-2, rtol=1e-2), \
        float(jnp.max(jnp.abs(feat - feat_ref)))
    assert jnp.allclose(cls, cls_ref, atol=1e-2, rtol=1e-2), \
        float(jnp.max(jnp.abs(cls - cls_ref)))

    # Loose sanity check against the pure-f32 module semantics.
    feat_f32, cls_f32 = reference_forward(x, params)
    assert jnp.allclose(feat, feat_f32, atol=1e-1, rtol=1e-1), \
        float(jnp.max(jnp.abs(feat - feat_f32)))
    assert jnp.allclose(cls, cls_f32, atol=1e-1, rtol=1e-1), \
        float(jnp.max(jnp.abs(cls - cls_f32)))

    print("KERNEL_OK")
</pallas_src>

<mosaic_0001>
module attributes {stable_mosaic.version = 11 : i64} {
  func.func @_mlp_kernel(%arg0: i32, %arg1: memref<16x94xf32, #tpu.memory_space<vmem>>, %arg2: memref<128x32xbf16, #tpu.memory_space<vmem>>, %arg3: memref<1x32xf32, #tpu.memory_space<vmem>>, %arg4: memref<32x32xbf16, #tpu.memory_space<vmem>>, %arg5: memref<1x32xf32, #tpu.memory_space<vmem>>, %arg6: memref<32x32xbf16, #tpu.memory_space<vmem>>, %arg7: memref<1x32xf32, #tpu.memory_space<vmem>>, %arg8: memref<32x32xbf16, #tpu.memory_space<vmem>>, %arg9: memref<1x32xf32, #tpu.memory_space<vmem>>, %arg10: memref<32x32xbf16, #tpu.memory_space<vmem>>, %arg11: memref<1x32xf32, #tpu.memory_space<vmem>>, %arg12: memref<16x32xf32, #tpu.memory_space<vmem>>) attributes {dimension_semantics = [#tpu.dimension_semantics<parallel>], iteration_bounds = array<i64: 2>, scalar_prefetch = 0 : i64, scratch_operands = 0 : i64, tpu.core_type = #tpu.core_type<tc>, window_params = [{transform_indices = @transform_0, window_bounds = array<i64: 16, 94>}, {pipeline_mode = #tpu.pipeline_mode<synchronous>, transform_indices = @transform_1, window_bounds = array<i64: 128, 32>}, {pipeline_mode = #tpu.pipeline_mode<synchronous>, transform_indices = @transform_2, window_bounds = array<i64: 1, 32>}, {pipeline_mode = #tpu.pipeline_mode<synchronous>, transform_indices = @transform_3, window_bounds = array<i64: 32, 32>}, {pipeline_mode = #tpu.pipeline_mode<synchronous>, transform_indices = @transform_4, window_bounds = array<i64: 1, 32>}, {pipeline_mode = #tpu.pipeline_mode<synchronous>, transform_indices = @transform_5, window_bounds = array<i64: 32, 32>}, {pipeline_mode = #tpu.pipeline_mode<synchronous>, transform_indices = @transform_6, window_bounds = array<i64: 1, 32>}, {pipeline_mode = #tpu.pipeline_mode<synchronous>, transform_indices = @transform_7, window_bounds = array<i64: 32, 32>}, {pipeline_mode = #tpu.pipeline_mode<synchronous>, transform_indices = @transform_8, window_bounds = array<i64: 1, 32>}, {pipeline_mode = #tpu.pipeline_mode<synchronous>, transform_indices = @transform_9, window_bounds = array<i64: 32, 32>}, {pipeline_mode = #tpu.pipeline_mode<synchronous>, transform_indices = @transform_10, window_bounds = array<i64: 1, 32>}, {transform_indices = @transform_11, window_bounds = array<i64: 16, 32>}]} {
    %c0 = arith.constant 0 : index
    %c0_0 = arith.constant 0 : index
    %0 = vector.load %arg1[%c0, %c0_0] : memref<16x94xf32, #tpu.memory_space<vmem>>, vector<16x94xf32>
    %1 = arith.truncf %0 : vector<16x94xf32> to vector<16x94xbf16>
    %cst = arith.constant 0.000000e+00 : bf16
    %2 = vector.broadcast %cst : bf16 to vector<16x34xbf16>
    %3 = tpu.concatenate %1, %2 in 1 : vector<16x94xbf16>, vector<16x34xbf16> -> vector<16x128xbf16>
    %c0_1 = arith.constant 0 : index
    %c0_2 = arith.constant 0 : index
    %4 = vector.load %arg2[%c0_1, %c0_2] : memref<128x32xbf16, #tpu.memory_space<vmem>>, vector<128x32xbf16>
    %cst_3 = arith.constant dense<0.000000e+00> : vector<16x32xf32>
    %5 = tpu.matmul %3, %4, %cst_3 {dimension_numbers = #tpu.dot_dimension_numbers<[1], [0], [0], [1], [0, 0, 1, 1], [], []>} : vector<16x128xbf16>, vector<128x32xbf16>, vector<16x32xf32> -> vector<16x32xf32>
    %c0_4 = arith.constant 0 : index
    %c0_5 = arith.constant 0 : index
    %6 = vector.load %arg3[%c0_4, %c0_5] : memref<1x32xf32, #tpu.memory_space<vmem>>, vector<1x32xf32>
    %7 = vector.broadcast %6 : vector<1x32xf32> to vector<16x32xf32>
    %8 = arith.addf %5, %7 : vector<16x32xf32>
    %cst_6 = arith.constant 0.000000e+00 : f32
    %9 = vector.broadcast %cst_6 : f32 to vector<16x32xf32>
    %10 = arith.maximumf %8, %9 : vector<16x32xf32>
    %11 = arith.truncf %10 : vector<16x32xf32> to vector<16x32xbf16>
    %c0_7 = arith.constant 0 : index
    %c0_8 = arith.constant 0 : index
    %12 = vector.load %arg4[%c0_7, %c0_8] : memref<32x32xbf16, #tpu.memory_space<vmem>>, vector<32x32xbf16>
    %cst_9 = arith.constant dense<0.000000e+00> : vector<16x32xf32>
    %13 = tpu.matmul %11, %12, %cst_9 {dimension_numbers = #tpu.dot_dimension_numbers<[1], [0], [0], [1], [0, 0, 1, 1], [], []>} : vector<16x32xbf16>, vector<32x32xbf16>, vector<16x32xf32> -> vector<16x32xf32>
    %c0_10 = arith.constant 0 : index
    %c0_11 = arith.constant 0 : index
    %14 = vector.load %arg5[%c0_10, %c0_11] : memref<1x32xf32, #tpu.memory_space<vmem>>, vector<1x32xf32>
    %15 = vector.broadcast %14 : vector<1x32xf32> to vector<16x32xf32>
    %16 = arith.addf %13, %15 : vector<16x32xf32>
    %cst_12 = arith.constant 0.000000e+00 : f32
    %17 = vector.broadcast %cst_12 : f32 to vector<16x32xf32>
    %18 = arith.maximumf %16, %17 : vector<16x32xf32>
    %19 = arith.truncf %18 : vector<16x32xf32> to vector<16x32xbf16>
    %c0_13 = arith.constant 0 : index
    %c0_14 = arith.constant 0 : index
    %20 = vector.load %arg6[%c0_13, %c0_14] : memref<32x32xbf16, #tpu.memory_space<vmem>>, vector<32x32xbf16>
    %cst_15 = arith.constant dense<0.000000e+00> : vector<16x32xf32>
    %21 = tpu.matmul %19, %20, %cst_15 {dimension_numbers = #tpu.dot_dimension_numbers<[1], [0], [0], [1], [0, 0, 1, 1], [], []>} : vector<16x32xbf16>, vector<32x32xbf16>, vector<16x32xf32> -> vector<16x32xf32>
    %c0_16 = arith.constant 0 : index
    %c0_17 = arith.constant 0 : index
    %22 = vector.load %arg7[%c0_16, %c0_17] : memref<1x32xf32, #tpu.memory_space<vmem>>, vector<1x32xf32>
    %23 = vector.broadcast %22 : vector<1x32xf32> to vector<16x32xf32>
    %24 = arith.addf %21, %23 : vector<16x32xf32>
    %25 = arith.truncf %24 : vector<16x32xf32> to vector<16x32xbf16>
    %c0_18 = arith.constant 0 : index
    %c0_19 = arith.constant 0 : index
    %26 = vector.load %arg8[%c0_18, %c0_19] : memref<32x32xbf16, #tpu.memory_space<vmem>>, vector<32x32xbf16>
    %cst_20 = arith.constant dense<0.000000e+00> : vector<16x32xf32>
    %27 = tpu.matmul %25, %26, %cst_20 {dimension_numbers = #tpu.dot_dimension_numbers<[1], [0], [0], [1], [0, 0, 1, 1], [], []>} : vector<16x32xbf16>, vector<32x32xbf16>, vector<16x32xf32> -> vector<16x32xf32>
    %c0_21 = arith.constant 0 : index
    %c0_22 = arith.constant 0 : index
    %28 = vector.load %arg9[%c0_21, %c0_22] : memref<1x32xf32, #tpu.memory_space<vmem>>, vector<1x32xf32>
    %29 = vector.broadcast %28 : vector<1x32xf32> to vector<16x32xf32>
    %30 = arith.addf %27, %29 : vector<16x32xf32>
    %cst_23 = arith.constant 0.000000e+00 : f32
    %31 = vector.broadcast %cst_23 : f32 to vector<16x32xf32>
    %32 = arith.maximumf %30, %31 : vector<16x32xf32>
    %33 = arith.truncf %32 : vector<16x32xf32> to vector<16x32xbf16>
    %c0_24 = arith.constant 0 : index
    %c0_25 = arith.constant 0 : index
    %34 = vector.load %arg10[%c0_24, %c0_25] : memref<32x32xbf16, #tpu.memory_space<vmem>>, vector<32x32xbf16>
    %cst_26 = arith.constant dense<0.000000e+00> : vector<16x32xf32>
    %35 = tpu.matmul %33, %34, %cst_26 {dimension_numbers = #tpu.dot_dimension_numbers<[1], [0], [0], [1], [0, 0, 1, 1], [], []>} : vector<16x32xbf16>, vector<32x32xbf16>, vector<16x32xf32> -> vector<16x32xf32>
    %c0_27 = arith.constant 0 : index
    %c0_28 = arith.constant 0 : index
    %36 = vector.load %arg11[%c0_27, %c0_28] : memref<1x32xf32, #tpu.memory_space<vmem>>, vector<1x32xf32>
    %37 = vector.broadcast %36 : vector<1x32xf32> to vector<16x32xf32>
    %38 = arith.addf %35, %37 : vector<16x32xf32>
    %39 = arith.addf %24, %38 : vector<16x32xf32>
    %c0_29 = arith.constant 0 : index
    %c0_30 = arith.constant 0 : index
    %40 = vector.load %arg12[%c0_29, %c0_30] : memref<16x32xf32, #tpu.memory_space<vmem>>, vector<16x32xf32>
    tpu.vector_store %arg12[%c0_29, %c0_30], %39 {strides = array<i32>} : memref<16x32xf32, #tpu.memory_space<vmem>>, vector<16x32xf32>,
    return
  }
  func.func @transform_0(%arg0: i32) -> (i32, i32) {
    %c0_i32 = arith.constant 0 : i32
    %c0_i32_0 = arith.constant 0 : i32
    return %arg0, %c0_i32 : i32, i32
  }
  func.func @transform_1(%arg0: i32) -> (i32, i32) {
    %c0_i32 = arith.constant 0 : i32
    %c0_i32_0 = arith.constant 0 : i32
    %c0_i32_1 = arith.constant 0 : i32
    return %c0_i32, %c0_i32_0 : i32, i32
  }
  func.func @transform_2(%arg0: i32) -> (i32, i32) {
    %c0_i32 = arith.constant 0 : i32
    %c0_i32_0 = arith.constant 0 : i32
    %c0_i32_1 = arith.constant 0 : i32
    return %c0_i32, %c0_i32_0 : i32, i32
  }
  func.func @transform_3(%arg0: i32) -> (i32, i32) {
    %c0_i32 = arith.constant 0 : i32
    %c0_i32_0 = arith.constant 0 : i32
    %c0_i32_1 = arith.constant 0 : i32
    return %c0_i32, %c0_i32_0 : i32, i32
  }
  func.func @transform_4(%arg0: i32) -> (i32, i32) {
    %c0_i32 = arith.constant 0 : i32
    %c0_i32_0 = arith.constant 0 : i32
    %c0_i32_1 = arith.constant 0 : i32
    return %c0_i32, %c0_i32_0 : i32, i32
  }
  func.func @transform_5(%arg0: i32) -> (i32, i32) {
    %c0_i32 = arith.constant 0 : i32
    %c0_i32_0 = arith.constant 0 : i32
    %c0_i32_1 = arith.constant 0 : i32
    return %c0_i32, %c0_i32_0 : i32, i32
  }
  func.func @transform_6(%arg0: i32) -> (i32, i32) {
    %c0_i32 = arith.constant 0 : i32
    %c0_i32_0 = arith.constant 0 : i32
    %c0_i32_1 = arith.constant 0 : i32
    return %c0_i32, %c0_i32_0 : i32, i32
  }
  func.func @transform_7(%arg0: i32) -> (i32, i32) {
    %c0_i32 = arith.constant 0 : i32
    %c0_i32_0 = arith.constant 0 : i32
    %c0_i32_1 = arith.constant 0 : i32
    return %c0_i32, %c0_i32_0 : i32, i32
  }
  func.func @transform_8(%arg0: i32) -> (i32, i32) {
    %c0_i32 = arith.constant 0 : i32
    %c0_i32_0 = arith.constant 0 : i32
    %c0_i32_1 = arith.constant 0 : i32
    return %c0_i32, %c0_i32_0 : i32, i32
  }
  func.func @transform_9(%arg0: i32) -> (i32, i32) {
    %c0_i32 = arith.constant 0 : i32
    %c0_i32_0 = arith.constant 0 : i32
    %c0_i32_1 = arith.constant 0 : i32
    return %c0_i32, %c0_i32_0 : i32, i32
  }
  func.func @transform_10(%arg0: i32) -> (i32, i32) {
    %c0_i32 = arith.constant 0 : i32
    %c0_i32_0 = arith.constant 0 : i32
    %c0_i32_1 = arith.constant 0 : i32
    return %c0_i32, %c0_i32_0 : i32, i32
  }
  func.func @transform_11(%arg0: i32) -> (i32, i32) {
    %c0_i32 = arith.constant 0 : i32
    %c0_i32_0 = arith.constant 0 : i32
    return %arg0, %c0_i32 : i32, i32
  }
}

</mosaic_0001>

<bundles_post_ra>
// kernel: mlp_ce_deepcluster.1
= control target key start
LH: loop header
LB: loop body
LE: loop exit
PB: predicated region body
PF: predicated region fallthrough
CT: control target
= control target key end

     0   :  { %16 = vsyncpa [#allocation3], 0  ;;  %s1508_s0 = inlined_call_operand.vmem [shape: f32[32,94], index: 0, kind: input, shape index: {}]   ;;  %s1509_s1 = inlined_call_operand.vmem [shape: bf16[128,32], index: 1, kind: input, shape index: {}]   ;;  %s1510_s2 = inlined_call_operand.hbm [shape: f32[1,32], index: 2, kind: input, shape index: {}]   ;;  %s1511_s3 = inlined_call_operand.vmem [shape: bf16[32,32], index: 3, kind: input, shape index: {}]   ;;  %s1512_s4 = inlined_call_operand.hbm [shape: f32[1,32], index: 4, kind: input, shape index: {}]   ;;  %s1513_s5 = inlined_call_operand.vmem [shape: bf16[32,32], index: 5, kind: input, shape index: {}]   ;;  %s1514_s6 = inlined_call_operand.hbm [shape: f32[1,32], index: 6, kind: input, shape index: {}]   ;;  %s1515_s7 = inlined_call_operand.vmem [shape: bf16[32,32], index: 7, kind: input, shape index: {}]   ;;  %s1516_s8 = inlined_call_operand.hbm [shape: f32[1,32], index: 8, kind: input, shape index: {}]   ;;  %s1517_s9 = inlined_call_operand.vmem [shape: bf16[32,32], index: 9, kind: input, shape index: {}]   ;;  %s1518_s10 = inlined_call_operand.vmem [shape: f32[1,32], index: 10, kind: input, shape index: {}]   ;;  %s1519_s11 = inlined_call_operand.vmem [shape: f32[32,32], index: 11, kind: output, shape index: {}]  }
   0x1   :  { %17 = vsyncpa [#allocation5], 0 }
   0x2   :  { %18 = vsyncpa [#allocation8], 0  ;;  %s1317_s17 = smov 0  }
   0x3 LB: > { %s942_s18 = sadd.s32 4294967295, %s1249_s17   ;;  %p944_p0 = scmp.ge.s32.totalorder %s1249_s17, 1  ;;  %s1249_s17 = sphi %s1317_s17, %s24_s17  }
   0x4   : > { %p291_p1 = scmp.lt.s32.totalorder %s1249_s17, 3  ;;  %p1327_p2 = scmp.eq.s32.totalorder %s942_s18, 0 }
   0x5   : > { %s1251_s20 = smov [#allocation4]   ;;  %s1252_s23 = smov [#allocation2]  }
   0x6   : > { %s1522_s19 = scalar_select %p1327_p2, 1, 0 }
   0x7   : > { %s321_s21 = sshll.u32 %s1251_s20, 4  ;;  %p1331_p3 = pnand %p944_p0, %p291_p1  ;;  %s322_s21 = int_to_ptr.vmem [resolvable:$true] %s321_s21 }
   0x8   : > { %s307_s24 = sshll.u32 %s1252_s23, 4  ;;  %s1253_s25 = smov [#allocation6]   ;;  %s308_s24 = int_to_ptr.vmem [resolvable:$true] %s307_s24 }
   0x9   : > { %p1076_p4 = pneg %p1331_p3  ;;  %s335_s26 = sshll.u32 %s1253_s25, 4  ;;  %s1343_s26 = int_to_ptr.vmem [resolvable:$true] %s335_s26 }
   0xa   : > { %s1254_s28 = smov [#allocation7]   ;;  %s1138_s30 = scalar_lea.vmem %s322_s21, 16 }
   0xb   : > { %p1339_p5 = pnand %p1327_p2, %p1076_p4  ;;  %s349_s29 = sshll.u32 %s1254_s28, 4  ;;  %s1345_s29 = int_to_ptr.vmem [resolvable:$true] %s349_s29 }
   0xc   : > { %p1139_p7 = scmp.ne.s32.totalorder %s322_s21, %s1138_s30  ;;  %s1145_s12 = scalar_lea.vmem %s322_s21, 32 }
   0xd   : > { %p1129_p6 = pneg %p1339_p5  ;;  %p1146_p10 = scmp.lt.s32.totalorder %s322_s21, %s322_s21 }
   0xe   : > { %p1147_p11 = scmp.lt.s32.totalorder %s1145_s12, %s1138_s30 }
   0xf   : > { %p1141_p8 = pnand %p1139_p7, %p1129_p6 }
  0x10   : > { %p1148_p12 = por %p1147_p11, %p1146_p10 }
  0x11   : > { %p1142_p9 = pneg %p1141_p8 }
  0x13   : > { %p1149_p13 = pnand %p1148_p12, %p1142_p9 }
  0x15   : > { %1152 = shalt.err (!%p1149_p13)
}
  0x16   : > { %1082 = dma.hbm_to_vmem [thread:$0]  (!%p1339_p5), %s1512_s4, 16, %s322_s21, [#allocation5]  }
  0x17   : > { %s1164_s15 = scalar_lea.vmem %s308_s24, 16  ;;  %s1171_s16 = scalar_lea.vmem %s308_s24, 32 }
  0x18   : > { %p1165_p0 = scmp.ne.s32.totalorder %s308_s24, %s1164_s15  ;;  %p1172_p7 = scmp.lt.s32.totalorder %s308_s24, %s308_s24 }
  0x19   : > { %p1173_p8 = scmp.lt.s32.totalorder %s1171_s16, %s1164_s15 }
  0x1a   : > { %p1167_p1 = pnand %p1165_p0, %p1129_p6 }
  0x1b   : > { %p1174_p2 = por %p1173_p8, %p1172_p7 }
  0x1c   : > { %p1168_p4 = pneg %p1167_p1 }
  0x1e   : > { %p1175_p10 = pnand %p1174_p2, %p1168_p4 }
  0x20   : > { %1178 = shalt.err (!%p1175_p10)
}
  0x21   : > { %1079 = dma.hbm_to_vmem [thread:$0]  (!%p1339_p5), %s1510_s2, 16, %s308_s24, [#allocation3]  }
  0x22   : > { %s1190_s21 = scalar_lea.vmem %s1343_s26, 16  ;;  %s1197_s25 = scalar_lea.vmem %s1343_s26, 32 }
  0x23   : > { %p1191_p9 = scmp.ne.s32.totalorder %s1343_s26, %s1190_s21  ;;  %p1198_p2 = scmp.lt.s32.totalorder %s1343_s26, %s1343_s26 }
  0x24   : > { %p1199_p13 = scmp.lt.s32.totalorder %s1197_s25, %s1190_s21 }
  0x25   : > { %p1193_p11 = pnand %p1191_p9, %p1129_p6 }
  0x26   : > { %p1200_p0 = por %p1199_p13, %p1198_p2 }
  0x27   : > { %p1194_p12 = pneg %p1193_p11 }
  0x29   : > { %p1201_p1 = pnand %p1200_p0, %p1194_p12 }
  0x2b   : > { %1204 = shalt.err (!%p1201_p1)
}
  0x2c   : > { %1085 = dma.hbm_to_vmem [thread:$0]  (!%p1339_p5), %s1514_s6, 16, %s1343_s26, [#allocation5]  }
  0x2d   : > { %s1216_s24 = scalar_lea.vmem %s1345_s29, 16  ;;  %s1223_s12 = scalar_lea.vmem %s1345_s29, 32 }
  0x2e   : > { %p1217_p4 = scmp.ne.s32.totalorder %s1345_s29, %s1216_s24  ;;  %p1224_p10 = scmp.lt.s32.totalorder %s1345_s29, %s1345_s29 }
  0x2f   : > { %p1225_p9 = scmp.lt.s32.totalorder %s1223_s12, %s1216_s24 }
  0x30   : > { %p1219_p7 = pnand %p1217_p4, %p1129_p6 }
  0x31   : > { %p1226_p11 = por %p1225_p9, %p1224_p10 }
  0x32   : > { %p1220_p8 = pneg %p1219_p7 }
  0x34   : > { %p1227_p12 = pnand %p1226_p11, %p1220_p8 }
  0x36   : > { %1230 = shalt.err (!%p1227_p12)
}
  0x37   : > { %1088 = dma.hbm_to_vmem [thread:$0]  (!%p1339_p5), %s1516_s8, 16, %s1345_s29, [#allocation8]  }
  0x38   : > { %377 = sbr.rel (%p1331_p3) target bundleno = 1112 (0x458), region = 64  ;;  %p1525_p6 = scmp.ne.s32.totalorder (!%p1331_p3), %s1522_s19, 0 }
  0x3d   : > { %1236 = dma.done.wait (%p1525_p6), [#allocation3], 16  }
  0x3e   : > { %1238 = vsyncadd (%p1525_p6), [#allocation3], 4294967280 }
  0x3f   : > { %1240 = dma.done.wait (%p1525_p6), [#allocation5], 32  }
  0x40   : > { %1242 = vsyncadd (%p1525_p6), [#allocation5], 4294967264 }
  0x41   : > { %1244 = dma.done.wait (%p1525_p6), [#allocation8], 16  }
  0x42   : > { %1246 = vsyncadd (%p1525_p6), [#allocation8], 4294967280  ;;  %v1255_v0 = vmov 0.0   ;;  %vm1256_vm0 = vmmov 0   ;;  %v1111_v1 = vld [vmem:[%s1509_s1 + $0x38] sm:$0xff]   ;;  %v1112_v2 = vld [vmem:[%s1509_s1 + $0x30] sm:$0xff]  }
  0x43   : > { %1008 = vmatprep.subr.bf16.mxu0 %v1255_v0  ;;  %1024 = vmatprep.mubr.msk.bf16.mxu0 %vm1256_vm0, %v1255_v0  ;;  %s955_s29 = sshll.u32 %s942_s18, 1  ;;  %v1113_v3 = vld [vmem:[%s1509_s1 + $0x28] sm:$0xff]   ;;  %v1114_v4 = vld [vmem:[%s1509_s1 + $0x20] sm:$0xff]   ;;  %v1115_v5 = vld [vmem:[%s1509_s1 + $0x18] sm:$0xff]   ;;  %vm445_vm1 = vcmask 769024   ;;  %vm588_vm2 = vcmask 261120  }
  0x44   : > { %1028 = vmatprep.subr.bf16.mxu1 %v1255_v0  ;;  %1032 = vmatprep.mubr.msk.bf16.mxu1 %vm1256_vm0, %v1255_v0  ;;  %p430_p3 = scmp.lt.s32.totalorder %s955_s29, 3  ;;  %v1116_v6 = vld [vmem:[%s1509_s1 + $0x10] sm:$0xff]   ;;  %v1117_v7 = vld [vmem:[%s1509_s1 + $0x8] sm:$0xff]   ;;  %v1118_v8 = vld [vmem:[%s1509_s1] sm:$0xff]  }
  0x45   : > { %1009 = vmatpush3.bf16.msra.mxu0 %v1111_v1  ;;  %v1119_v12 = vld [vmem:[%s1511_s3 + $0x8] sm:$0xff]   ;;  %v1120_v13 = vld [vmem:[%s1511_s3] sm:$0xff]  }
  0x46   : > { %1010 = vmatprep.subr.bf16.mxu0 %v1255_v0  ;;  %s1527_s29 = smov (!%p430_p3, %s955_s29), 3  ;;  %1029 = vmatpush3.bf16.msra.mxu1 %v1119_v12  ;;  %v959_v14 = vld [vmem:[#allocation2] ss:$0 sm:$0xff]  ;;  %v1121_v24 = vld [vmem:[%s1513_s5 + $0x8] sm:$0xff]   ;;  %v969_v26 = vld [vmem:[#allocation4] ss:$0 sm:$0xff] }
  0x47   : > { %s956_s30 = sshll.u32 %s1527_s29, 3  ;;  %1030 = vmatprep.subr.bf16.mxu1 %v1255_v0  ;;  %v1122_v25 = vld [vmem:[%s1513_s5] sm:$0xff]   ;;  %v1123_v36 = vld [vmem:[%s1515_s7 + $0x8] sm:$0xff]  }
  0x48   : > { %s433_s22 = scalar_lea.vmem %s1508_s0, %s956_s30  ;;  %v1124_v37 = vld [vmem:[%s1515_s7] sm:$0xff]   ;;  %v1125_v46 = vld [vmem:[%s1517_s9 + $0x8] sm:$0xff]   ;;  %s439_s23 = scalar_lea.vmem %s1519_s11, %s956_s30 }
  0x49   : > { %1011 = vmatpush3.bf16.msra.mxu0 %v1112_v2  ;;  %v442_v9 = vld [vmem:[%s433_s22] sm:$0xff]  ;;  %v443_v10 = vld [vmem:[%s433_s22 + $0x8] sm:$0xff] }
  0x4a   : > { %1012 = vmatprep.subr.bf16.mxu0 %v1255_v0  ;;  %v444_v11 = vpack.c.bf16 %v443_v10, %v442_v9  ;;  %1031 = vmatpush3.bf16.msra.mxu1 %v1120_v13  ;;  %v973_v39 = vld [vmem:[#allocation6] ss:$0 sm:$0xff]  ;;  %v977_v48 = vld [vmem:[#allocation7] ss:$0 sm:$0xff]  ;;  %v981_v58 = vld [vmem:[%s1518_s10] ss:$0 sm:$0xff] }
  0x4b   : > { %1036 = vmatprep.subr.bf16.mxu1 %v1255_v0  ;;  %v1126_v47 = vld [vmem:[%s1517_s9] sm:$0xff]  }
  0x4d   : > { %1013 = vmatpush3.bf16.msra.mxu0 %v1113_v3 }
  0x4e   : > { %1014 = vmatprep.subr.bf16.mxu0 %v1255_v0 }
  0x51   : > { %1015 = vmatpush3.bf16.msra.mxu0 %v1114_v4 }
  0x52   : > { %1016 = vmatprep.subr.bf16.mxu0 %v1255_v0 }
  0x55   : > { %1017 = vmatpush3.bf16.msra.mxu0 %v1115_v5 }
  0x56   : > { %1018 = vmatprep.subr.bf16.mxu0 %v1255_v0 }
  0x59   : > { %1019 = vmatpush3.bf16.msra.mxu0 %v1116_v6 }
  0x5a   : > { %1020 = vmatprep.subr.bf16.mxu0 %v1255_v0 }
  0x5d   : > { %1021 = vmatpush3.bf16.msra.mxu0 %v1117_v7 }
  0x5e   : > { %1022 = vmatprep.subr.bf16.mxu0 %v1255_v0 }
  0x61   : > { %1023 = vmatpush3.bf16.msra.mxu0 %v1118_v8 }
  0x64   : > { %1025 = vmatmul.mubr.msk.bf16.vlgmr.msra.gmra.mxu0 %vm445_vm1, %v444_v11 }
 0x124   : > { %v555_v15 = vpop.f32.mrf.mxu0 }
 0x125   : > { %v556_v17 = vadd.f32 %v959_v14, %v555_v15 }
 0x126   : > { %v1026_v16 = vpop.f32.mrf.mxu0 }
 0x127   : > { %v562_v21 = vmax.f32 %v556_v17, 0.0 }
 0x128   : > { %v558_v18 = vpop.f32.mrf.mxu0 }
 0x129   : > { %v559_v19 = vadd.f32 %v959_v14, %v558_v18 }
 0x12a   : > { %v1027_v20 = vpop.f32.mrf.mxu0 }
 0x12b   : > { %v563_v22 = vmax.f32 %v559_v19, 0.0 }
 0x12d   : > { %v564_v23 = vpack.c.bf16 %v563_v22, %v562_v21 }
 0x12f   : > { %1033 = vmatmul.mubr.msk.bf16.vlgmr.msra.gmra.mxu1 %vm588_vm2, %v564_v23 }
 0x130   : > { %1040 = vmatprep.mubr.msk.bf16.mxu1 %vm1256_vm0, %v1255_v0  ;;  %1037 = vmatpush3.bf16.msra.mxu1 %v1121_v24 }
 0x131   : > { %1038 = vmatprep.subr.bf16.mxu1 %v1255_v0 }
 0x134   : > { %1039 = vmatpush3.bf16.msra.mxu1 %v1122_v25 }
 0x135   : > { %1044 = vmatprep.subr.bf16.mxu1 %v1255_v0 }
 0x1ef   : > { %v626_v27 = vpop.f32.mrf.mxu1 }
 0x1f0   : > { %v627_v29 = vadd.f32 %v969_v26, %v626_v27 }
 0x1f1   : > { %v1034_v28 = vpop.f32.mrf.mxu1 }
 0x1f2   : > { %v633_v33 = vmax.f32 %v627_v29, 0.0 }
 0x1f3   : > { %v629_v30 = vpop.f32.mrf.mxu1 }
 0x1f4   : > { %v630_v31 = vadd.f32 %v969_v26, %v629_v30 }
 0x1f5   : > { %v1035_v32 = vpop.f32.mrf.mxu1 }
 0x1f6   : > { %v634_v34 = vmax.f32 %v630_v31, 0.0 }
 0x1f8   : > { %v635_v35 = vpack.c.bf16 %v634_v34, %v633_v33 }
 0x1fa   : > { %1041 = vmatmul.mubr.msk.bf16.vlgmr.msra.gmra.mxu1 %vm588_vm2, %v635_v35 }
 0x1fb   : > { %1048 = vmatprep.mubr.msk.bf16.mxu1 %vm1256_vm0, %v1255_v0  ;;  %1045 = vmatpush3.bf16.msra.mxu1 %v1123_v36 }
 0x1fc   : > { %1046 = vmatprep.subr.bf16.mxu1 %v1255_v0 }
 0x1ff   : > { %1047 = vmatpush3.bf16.msra.mxu1 %v1124_v37 }
 0x200   : > { %1052 = vmatprep.subr.bf16.mxu1 %v1255_v0 }
 0x2ba   : > { %v696_v38 = vpop.f32.mrf.mxu1 }
 0x2bb   : > { %v697_v42 = vadd.f32 %v973_v39, %v696_v38 }
 0x2bc   : > { %v1042_v40 = vpop.f32.mrf.mxu1 }
 0x2be   : > { %v699_v41 = vpop.f32.mrf.mxu1 }
 0x2bf   : > { %v700_v43 = vadd.f32 %v973_v39, %v699_v41 }
 0x2c0   : > { %v1043_v44 = vpop.f32.mrf.mxu1 }
 0x2c1   : > { %v703_v45 = vpack.c.bf16 %v700_v43, %v697_v42 }
 0x2c3   : > { %1049 = vmatmul.mubr.msk.bf16.vlgmr.msra.gmra.mxu1 %vm588_vm2, %v703_v45 }
 0x2c4   : > { %1056 = vmatprep.mubr.msk.bf16.mxu1 %vm1256_vm0, %v1255_v0  ;;  %1053 = vmatpush3.bf16.msra.mxu1 %v1125_v46 }
 0x2c5   : > { %1054 = vmatprep.subr.bf16.mxu1 %v1255_v0 }
 0x2c8   : > { %1055 = vmatpush3.bf16.msra.mxu1 %v1126_v47 }
 0x383   : > { %v764_v49 = vpop.f32.mrf.mxu1 }
 0x384   : > { %v765_v51 = vadd.f32 %v977_v48, %v764_v49 }
 0x385   : > { %v1050_v50 = vpop.f32.mrf.mxu1 }
 0x386   : > { %v771_v55 = vmax.f32 %v765_v51, 0.0 }
 0x387   : > { %v767_v52 = vpop.f32.mrf.mxu1 }
 0x388   : > { %v768_v53 = vadd.f32 %v977_v48, %v767_v52 }
 0x389   : > { %v1051_v54 = vpop.f32.mrf.mxu1 }
 0x38a   : > { %v772_v56 = vmax.f32 %v768_v53, 0.0 }
 0x38c   : > { %v773_v57 = vpack.c.bf16 %v772_v56, %v771_v55 }
 0x38e   : > { %1057 = vmatmul.mubr.msk.bf16.vlgmr.msra.gmra.mxu1 %vm588_vm2, %v773_v57 }
 0x44e   : > { %v834_v59 = vpop.f32.mrf.mxu1 }
 0x44f   : > { %v835_v60 = vadd.f32 %v981_v58, %v834_v59 }
 0x450   : > { %v1058_v61 = vpop.f32.mrf.mxu1 }
 0x451   : > { %v841_v62 = vadd.f32 %v835_v60, %v697_v42 }
 0x452   : > { %v837_v63 = vpop.f32.mrf.mxu1 }
 0x453   : > { %843 = vst.msk [vmem:[%s439_s23] sm:$0xff] %vm588_vm2, %v841_v62  ;;  %v838_v0 = vadd.f32 %v981_v58, %v837_v63 }
 0x454   : > { %v1059_v1 = vpop.f32.mrf.mxu1 }
 0x455   : > { %v842_v2 = vadd.f32 %v838_v0, %v700_v43 }
 0x457   : > { %844 = vst.msk [vmem:[%s439_s23 + $0x8] sm:$0xff] %vm588_vm2, %v842_v2 }
 0x458 PF: > { %s24_s17 = sadd.s32 1, %s1249_s17  }
 0x459   : > { %p21_p5 = scmp.ge.s32.totalorder %s24_s17, 4  }
 0x45b   :  { %23 = sbr.rel (!%p21_p5) target bundleno = 3 (0x3), region = 111 }
 0x460   :  { %867 = vsyncpa [#allocation3], 1 }
 0x461   :  { %869 = vsyncpa [#allocation3 + $0x1], 1 }
 0x462   :  { %870 = vsyncpa [#allocation5], 1 }
 0x463   :  { %871 = vsyncpa [#allocation8], 1 }

</bundles_post_ra>
